<compile_context>
chip_gen: v6e
topology: v6e:2x2x1
jax: 0.10.0
libtpu: 0.0.40
codegen_flags: <defaults>
</compile_context>

<pallas_src>
import functools

import jax
import jax.numpy as jnp
from jax.experimental import pallas as pl
from jax.experimental.pallas import tpu as pltpu

# ----------------------------- "args" config --------------------------------
IMG_EMBED_POOL_TYPE = "avg"   # 'avg' -> AdaptiveAvgPool2d, else AdaptiveMaxPool2d
NUM_IMAGE_EMBEDS = 2          # -> pool target (2, 1)
IMG_HIDDEN_SZ = 32            # stand-in for resnet152's 2048-channel features
N_CLASSES = 5
LATENT = 128                  # mu / logvar width (hard-coded 128 in the module)
CLF_PAD = 128                 # clf logits padded to a full 128-lane store

# MXU operand dtype for the head matmuls (f32 accumulation is kept via
# preferred_element_type). bf16 cuts MXU passes ~3x and halves weight DMA bytes
# on all generations; elementwise math stays f32.
HEAD_MATMUL_DTYPE = jnp.bfloat16


# ------------------------------ fused Pallas kernel --------------------------
def _image_clf_kernel(x_ref, wst_ref, bst_ref, sel_ref, eps_ref,
                      wmulv_ref, bmulv_ref, wclf_ref, bclf_ref,
                      out_ref, *, batch, cin, cfeat, pool_bins, bin_cols,
                      pool_type, latent):
    wst = wst_ref[...]                       # (Cf, Cin) f32
    bst = bst_ref[...]                       # (Cf, 1)  f32

    pooled = []                              # per-batch (P, Cf) f32
    for b in range(batch):                   # B tiny & static -> unroll
        # stand-in backbone: 1x1 conv as Cin broadcast-FMAs on the VPU, in
        # channel-major layout (Cf sublanes x H*W lanes): fully lane-dense,
        # live state ~ Cf*HW/1024 vregs per image (no spills).
        acc = wst[:, 0:1] * x_ref[b * cin:b * cin + 1, :]
        for c in range(1, cin):
            acc = acc + wst[:, c:c + 1] * x_ref[b * cin + c:b * cin + c + 1, :]
        feat = jnp.maximum(acc + bst, 0.0)   # (Cf, H*W), channel-major

        if pool_type == "avg":
            # AdaptiveAvgPool2d((P,1)) fused as a trans-B matmul against the
            # precomputed 0/(1/S) selector -> (P, Cf), already in the
            # batch-row / feature-lane orientation the head needs.
            pr = jax.lax.dot_general(
                sel_ref[...], feat, (((1,), (1,)), ((), ())),
                preferred_element_type=jnp.float32)
        else:
            # AdaptiveMaxPool2d((P,1)) (not exercised by the default config):
            # per-bin lane-max columns + one tiny XLU transpose.
            cols = [jnp.max(feat[:, p * bin_cols:(p + 1) * bin_cols],
                            axis=1, keepdims=True) for p in range(pool_bins)]
            pr = jnp.transpose(jnp.concatenate(cols, axis=1))
        pooled.append(pr)

    # ---- ImageClf head -------------------------------------------------
    # torch: flat = reshape(pooled, (B, P*Cf)); mu|logvar = flat @ W + b.
    # Split the stacked matmul over the P pool bins (mathematically identical
    # to flat @ w_mulv) so no sublane->lane flatten/relayout is needed.
    mulv = bmulv_ref[...]                                  # (1, 2L), broadcasts
    for p in range(pool_bins):
        xp = jnp.concatenate([pooled[b][p:p + 1, :] for b in range(batch)],
                             axis=0)                       # (B, Cf) f32
        wp = wmulv_ref[p * cfeat:(p + 1) * cfeat, :]       # (Cf, 2L) bf16
        mulv = mulv + jnp.dot(xp.astype(wp.dtype), wp,
                              preferred_element_type=jnp.float32)

    mu = mulv[:, :latent]
    logvar = mulv[:, latent:]

    # _reparameterize: std = sqrt(exp(logvar)) == exp(0.5*logvar) (1 EUP op).
    std = jnp.exp(0.5 * logvar)
    z = mu + eps_ref[...] * std

    wclf = wclf_ref[...]                                   # (L, 128) bf16
    logits = jnp.dot(z.astype(wclf.dtype), wclf,
                     preferred_element_type=jnp.float32) + bclf_ref[...]

    # single lane-dense store: [mu | logvar | padded logits] -> (B, 384)
    out_ref[...] = jnp.concatenate([mulv, logits], axis=1)


# ------------------------------ param packing --------------------------------
def _spec2(shape):
    """Full-array 2-D BlockSpec for grid=(1,); no late-binding closures."""
    assert len(shape) == 2
    return pl.BlockSpec(shape, lambda i: (0, 0))


def prepare_params(params, image_hw):
    """One-time packing of ImageClf weights for the fused kernel.

    Call once (outside the per-step jit) so no concat/pad/cast/transpose XLA
    ops (or their HBM round trips) run per forward call.
    """
    H, W = image_hw
    P, Cf = NUM_IMAGE_EMBEDS, IMG_HIDDEN_SZ
    assert H % P == 0, "adaptive pool bins assume H divisible by num_image_embeds"
    S = (H // P) * W

    # stem in channel-major orientation: (Cf, Cin) weights, (Cf, 1) bias.
    w_stem_t = jnp.transpose(params["w_stem"]).astype(jnp.float32)
    b_stem_c = jnp.transpose(params["b_stem"]).astype(jnp.float32)

    # AdaptiveAvgPool2d((P,1)) as a (P, H*W) selector holding 1/S inside bin p.
    s_idx = jnp.arange(H * W, dtype=jnp.int32)[None, :] // S
    p_idx = jnp.arange(P, dtype=jnp.int32)[:, None]
    pool_sel = jnp.where(s_idx == p_idx, 1.0 / S, 0.0).astype(jnp.float32)

    # stacked mu|logvar weights -> one matmul family (bf16 MXU operands).
    w_mulv = jnp.concatenate([params["w_mu"], params["w_lv"]], axis=1)
    b_mulv = jnp.concatenate([params["b_mu"], params["b_lv"]], axis=1)

    # clf zero-padded to 128 lanes so the kernel logit store is lane-dense.
    ncls = params["w_clf"].shape[1]
    w_clf = jnp.pad(params["w_clf"], ((0, 0), (0, CLF_PAD - ncls)))
    b_clf = jnp.pad(params["b_clf"], ((0, 0), (0, CLF_PAD - ncls)))

    return {
        "w_stem_t": w_stem_t,
        "b_stem_c": b_stem_c,
        "pool_sel": pool_sel,
        "w_mulv": w_mulv.astype(HEAD_MATMUL_DTYPE),
        "b_mulv": b_mulv.astype(jnp.float32),
        "w_clf": w_clf.astype(HEAD_MATMUL_DTYPE),
        "b_clf": b_clf.astype(jnp.float32),
    }


# ------------------------------ pallas_call wrapper --------------------------
def image_clf_forward(x, packed, eps):
    """x: [B, Cin, H, W] f32; packed: prepare_params() output; eps: [B, 128].
    Returns (mu, logvar, out) exactly like ImageClf.forward."""
    B, Cin, H, W = x.shape
    P, Cf, L = NUM_IMAGE_EMBEDS, IMG_HIDDEN_SZ, LATENT
    assert H % P == 0, "adaptive pool bins assume H divisible by num_image_embeds"
    S = (H // P) * W
    D = P * Cf

    # contiguous (free) reshape -> channel-major rows, H*W lanes: one dense DMA.
    x_cm = x.reshape(B * Cin, H * W)

    ins = (x_cm, packed["w_stem_t"], packed["b_stem_c"], packed["pool_sel"],
           eps, packed["w_mulv"], packed["b_mulv"], packed["w_clf"],
           packed["b_clf"])

    flops = (2 * B * H * W * Cin * Cf        # stem FMAs
             + 2 * B * P * H * W * Cf        # pooling matmul
             + 2 * B * D * 2 * L             # stacked mu/logvar matmul
             + 2 * B * L * CLF_PAD           # clf matmul
             + 4 * B * L)                    # reparameterize
    bytes_accessed = int(sum(a.size * a.dtype.itemsize for a in ins)
                         + 4 * B * (2 * L + CLF_PAD))

    kernel = functools.partial(
        _image_clf_kernel,
        batch=B, cin=Cin, cfeat=Cf, pool_bins=P, bin_cols=S,
        pool_type=IMG_EMBED_POOL_TYPE, latent=L)

    # grid=(1,): the whole problem (<1 MiB VMEM incl. double-buffering) is one
    # tile; splitting it would only add per-step overhead at this size. At
    # resnet scale (Cf=2048, large B*H*W) switch to a row-tiled grid with a
    # "parallel" leading axis (v7x: 2 TensorCores) and re-derive the tile size
    # against v7x's 64 MiB VMEM with an explicit vmem_limit_bytes.
    out_slab = pl.pallas_call(
        kernel,
        out_shape=jax.ShapeDtypeStruct((B, 2 * L + CLF_PAD), jnp.float32),
        grid=(1,),
        in_specs=[_spec2(a.shape) for a in ins],
        out_specs=_spec2((B, 2 * L + CLF_PAD)),
        compiler_params=pltpu.CompilerParams(
            dimension_semantics=("arbitrary",)),
        cost_estimate=pl.CostEstimate(
            flops=flops, transcendentals=B * L, bytes_accessed=bytes_accessed),
    )(*ins)

    mu = out_slab[:, :L]
    logvar = out_slab[:, L:2 * L]
    out = out_slab[:, 2 * L:2 * L + N_CLASSES]
    return mu, logvar, out


# ------------------------------ params & reference ---------------------------
def init_params(key):
    P, Cf, Cin = NUM_IMAGE_EMBEDS, IMG_HIDDEN_SZ, 3
    D = Cf * P
    ks = jax.random.split(key, 8)
    s = 0.05
    return {
        "w_stem": s * jax.random.normal(ks[0], (Cin, Cf), jnp.float32),
        "b_stem": s * jax.random.normal(ks[1], (1, Cf), jnp.float32),
        "w_mu":   s * jax.random.normal(ks[2], (D, LATENT), jnp.float32),
        "b_mu":   s * jax.random.normal(ks[3], (1, LATENT), jnp.float32),
        "w_lv":   s * jax.random.normal(ks[4], (D, LATENT), jnp.float32),
        "b_lv":   s * jax.random.normal(ks[5], (1, LATENT), jnp.float32),
        "w_clf":  s * jax.random.normal(ks[6], (LATENT, N_CLASSES), jnp.float32),
        "b_clf":  s * jax.random.normal(ks[7], (1, N_CLASSES), jnp.float32),
    }


def _reference_forward(x, params, eps):
    """Pure-jnp f32 reference of ImageClf.forward (with the stand-in stem)."""
    B, Cin, H, W = x.shape
    P, Cf = NUM_IMAGE_EMBEDS, IMG_HIDDEN_SZ
    x_cl = jnp.transpose(x, (0, 2, 3, 1))                        # NHWC
    feat = jnp.maximum(
        jnp.einsum("bhwc,cf->bhwf", x_cl, params["w_stem"]) + params["b_stem"][0],
        0.0)
    feat4 = feat.reshape(B, P, (H // P) * W, Cf)
    if IMG_EMBED_POOL_TYPE == "avg":
        pooled = feat4.mean(axis=2)
    else:
        pooled = feat4.max(axis=2)
    flat = pooled.reshape(B, P * Cf)                             # torch flatten order
    mu = flat @ params["w_mu"] + params["b_mu"]
    logvar = flat @ params["w_lv"] + params["b_lv"]
    z = mu + eps * jnp.sqrt(jnp.exp(logvar))                     # torch formula
    out = z @ params["w_clf"] + params["b_clf"]
    return mu, logvar, out


# ------------------------------ demo / self-check ----------------------------
if __name__ == "__main__":
    key = jax.random.PRNGKey(0)
    k_x, k_eps, k_p = jax.random.split(key, 3)

    B, Cin, H, W = 2, 3, 16, 16
    x = jax.random.normal(k_x, (B, Cin, H, W), jnp.float32)
    # torch.randn_like(std) equivalent noise (cannot bit-match torch RNG);
    # pass eps = 0 at eval time to match inference behavior.
    eps = jax.random.normal(k_eps, (B, LATENT), jnp.float32)
    params = init_params(k_p)
    packed = prepare_params(params, (H, W))          # one-time weight packing

    fwd = jax.jit(image_clf_forward)
    mu, logvar, out = fwd(x, packed, eps)
    jax.block_until_ready((mu, logvar, out))

    assert mu.shape == (B, LATENT)
    assert logvar.shape == (B, LATENT)
    assert out.shape == (B, N_CLASSES)

    mu_r, lv_r, out_r = _reference_forward(x, params, eps)
    # mu/logvar: only bf16 operand rounding on a small-magnitude K=64 dot.
    for got, ref in ((mu, mu_r), (logvar, lv_r)):
        err = float(jnp.max(jnp.abs(got - ref)))
        assert jnp.allclose(got, ref, rtol=5e-3, atol=2e-3), err
    # logits: z ~ O(1) is cast to bf16 for the clf matmul (K=128) -> a bit looser.
    err = float(jnp.max(jnp.abs(out - out_r)))
    assert jnp.allclose(out, out_r, rtol=1e-2, atol=1e-2), err

    print("KERNEL_OK")
</pallas_src>

<mosaic_0001>
module attributes {stable_mosaic.version = 11 : i64} {
  func.func @_image_clf_kernel(%arg0: i32, %arg1: memref<6x256xf32, #tpu.memory_space<vmem>>, %arg2: memref<32x3xf32, #tpu.memory_space<vmem>>, %arg3: memref<32x1xf32, #tpu.memory_space<vmem>>, %arg4: memref<2x256xf32, #tpu.memory_space<vmem>>, %arg5: memref<2x128xf32, #tpu.memory_space<vmem>>, %arg6: memref<64x256xbf16, #tpu.memory_space<vmem>>, %arg7: memref<1x256xf32, #tpu.memory_space<vmem>>, %arg8: memref<128x128xbf16, #tpu.memory_space<vmem>>, %arg9: memref<1x128xf32, #tpu.memory_space<vmem>>, %arg10: memref<2x384xf32, #tpu.memory_space<vmem>>) attributes {dimension_semantics = [#tpu.dimension_semantics<arbitrary>], iteration_bounds = array<i64: 1>, scalar_prefetch = 0 : i64, scratch_operands = 0 : i64, tpu.core_type = #tpu.core_type<tc>, window_params = [{pipeline_mode = #tpu.pipeline_mode<synchronous>, transform_indices = @transform_0, window_bounds = array<i64: 6, 256>}, {pipeline_mode = #tpu.pipeline_mode<synchronous>, transform_indices = @transform_1, window_bounds = array<i64: 32, 3>}, {pipeline_mode = #tpu.pipeline_mode<synchronous>, transform_indices = @transform_2, window_bounds = array<i64: 32, 1>}, {pipeline_mode = #tpu.pipeline_mode<synchronous>, transform_indices = @transform_3, window_bounds = array<i64: 2, 256>}, {pipeline_mode = #tpu.pipeline_mode<synchronous>, transform_indices = @transform_4, window_bounds = array<i64: 2, 128>}, {pipeline_mode = #tpu.pipeline_mode<synchronous>, transform_indices = @transform_5, window_bounds = array<i64: 64, 256>}, {pipeline_mode = #tpu.pipeline_mode<synchronous>, transform_indices = @transform_6, window_bounds = array<i64: 1, 256>}, {pipeline_mode = #tpu.pipeline_mode<synchronous>, transform_indices = @transform_7, window_bounds = array<i64: 128, 128>}, {pipeline_mode = #tpu.pipeline_mode<synchronous>, transform_indices = @transform_8, window_bounds = array<i64: 1, 128>}, {pipeline_mode = #tpu.pipeline_mode<synchronous>, transform_indices = @transform_9, window_bounds = array<i64: 2, 384>}]} {
    %c0 = arith.constant 0 : index
    %c0_0 = arith.constant 0 : index
    %0 = vector.load %arg2[%c0, %c0_0] : memref<32x3xf32, #tpu.memory_space<vmem>>, vector<32x3xf32>
    %c0_1 = arith.constant 0 : index
    %c0_2 = arith.constant 0 : index
    %1 = vector.load %arg3[%c0_1, %c0_2] : memref<32x1xf32, #tpu.memory_space<vmem>>, vector<32x1xf32>
    %2 = vector.extract_strided_slice %0 {offsets = [0, 0], sizes = [32, 1], strides = [1, 1]} : vector<32x3xf32> to vector<32x1xf32>
    %c0_3 = arith.constant 0 : index
    %c0_4 = arith.constant 0 : index
    %3 = vector.load %arg1[%c0_3, %c0_4] : memref<6x256xf32, #tpu.memory_space<vmem>>, vector<1x256xf32>
    %4 = vector.broadcast %2 : vector<32x1xf32> to vector<32x256xf32>
    %5 = vector.broadcast %3 : vector<1x256xf32> to vector<32x256xf32>
    %6 = arith.mulf %4, %5 : vector<32x256xf32>
    %7 = vector.extract_strided_slice %0 {offsets = [0, 1], sizes = [32, 1], strides = [1, 1]} : vector<32x3xf32> to vector<32x1xf32>
    %c1 = arith.constant 1 : index
    %c0_5 = arith.constant 0 : index
    %8 = vector.load %arg1[%c1, %c0_5] : memref<6x256xf32, #tpu.memory_space<vmem>>, vector<1x256xf32>
    %9 = vector.broadcast %7 : vector<32x1xf32> to vector<32x256xf32>
    %10 = vector.broadcast %8 : vector<1x256xf32> to vector<32x256xf32>
    %11 = arith.mulf %9, %10 : vector<32x256xf32>
    %12 = arith.addf %6, %11 : vector<32x256xf32>
    %13 = vector.extract_strided_slice %0 {offsets = [0, 2], sizes = [32, 1], strides = [1, 1]} : vector<32x3xf32> to vector<32x1xf32>
    %c2 = arith.constant 2 : index
    %c0_6 = arith.constant 0 : index
    %14 = vector.load %arg1[%c2, %c0_6] : memref<6x256xf32, #tpu.memory_space<vmem>>, vector<1x256xf32>
    %15 = vector.broadcast %13 : vector<32x1xf32> to vector<32x256xf32>
    %16 = vector.broadcast %14 : vector<1x256xf32> to vector<32x256xf32>
    %17 = arith.mulf %15, %16 : vector<32x256xf32>
    %18 = arith.addf %12, %17 : vector<32x256xf32>
    %19 = vector.broadcast %1 : vector<32x1xf32> to vector<32x256xf32>
    %20 = arith.addf %18, %19 : vector<32x256xf32>
    %cst = arith.constant 0.000000e+00 : f32
    %21 = vector.broadcast %cst : f32 to vector<32x256xf32>
    %22 = arith.maximumf %20, %21 : vector<32x256xf32>
    %c0_7 = arith.constant 0 : index
    %c0_8 = arith.constant 0 : index
    %23 = vector.load %arg4[%c0_7, %c0_8] : memref<2x256xf32, #tpu.memory_space<vmem>>, vector<2x256xf32>
    %cst_9 = arith.constant dense<0.000000e+00> : vector<2x32xf32>
    %24 = tpu.matmul %23, %22, %cst_9 {dimension_numbers = #tpu.dot_dimension_numbers<[1], [1], [0], [0], [0, 0, 1, 0], [], []>} : vector<2x256xf32>, vector<32x256xf32>, vector<2x32xf32> -> vector<2x32xf32>
    %25 = vector.extract_strided_slice %0 {offsets = [0, 0], sizes = [32, 1], strides = [1, 1]} : vector<32x3xf32> to vector<32x1xf32>
    %c3 = arith.constant 3 : index
    %c0_10 = arith.constant 0 : index
    %26 = vector.load %arg1[%c3, %c0_10] : memref<6x256xf32, #tpu.memory_space<vmem>>, vector<1x256xf32>
    %27 = vector.broadcast %25 : vector<32x1xf32> to vector<32x256xf32>
    %28 = vector.broadcast %26 : vector<1x256xf32> to vector<32x256xf32>
    %29 = arith.mulf %27, %28 : vector<32x256xf32>
    %30 = vector.extract_strided_slice %0 {offsets = [0, 1], sizes = [32, 1], strides = [1, 1]} : vector<32x3xf32> to vector<32x1xf32>
    %c4 = arith.constant 4 : index
    %c0_11 = arith.constant 0 : index
    %31 = vector.load %arg1[%c4, %c0_11] : memref<6x256xf32, #tpu.memory_space<vmem>>, vector<1x256xf32>
    %32 = vector.broadcast %30 : vector<32x1xf32> to vector<32x256xf32>
    %33 = vector.broadcast %31 : vector<1x256xf32> to vector<32x256xf32>
    %34 = arith.mulf %32, %33 : vector<32x256xf32>
    %35 = arith.addf %29, %34 : vector<32x256xf32>
    %36 = vector.extract_strided_slice %0 {offsets = [0, 2], sizes = [32, 1], strides = [1, 1]} : vector<32x3xf32> to vector<32x1xf32>
    %c5 = arith.constant 5 : index
    %c0_12 = arith.constant 0 : index
    %37 = vector.load %arg1[%c5, %c0_12] : memref<6x256xf32, #tpu.memory_space<vmem>>, vector<1x256xf32>
    %38 = vector.broadcast %36 : vector<32x1xf32> to vector<32x256xf32>
    %39 = vector.broadcast %37 : vector<1x256xf32> to vector<32x256xf32>
    %40 = arith.mulf %38, %39 : vector<32x256xf32>
    %41 = arith.addf %35, %40 : vector<32x256xf32>
    %42 = vector.broadcast %1 : vector<32x1xf32> to vector<32x256xf32>
    %43 = arith.addf %41, %42 : vector<32x256xf32>
    %cst_13 = arith.constant 0.000000e+00 : f32
    %44 = vector.broadcast %cst_13 : f32 to vector<32x256xf32>
    %45 = arith.maximumf %43, %44 : vector<32x256xf32>
    %c0_14 = arith.constant 0 : index
    %c0_15 = arith.constant 0 : index
    %46 = vector.load %arg4[%c0_14, %c0_15] : memref<2x256xf32, #tpu.memory_space<vmem>>, vector<2x256xf32>
    %cst_16 = arith.constant dense<0.000000e+00> : vector<2x32xf32>
    %47 = tpu.matmul %46, %45, %cst_16 {dimension_numbers = #tpu.dot_dimension_numbers<[1], [1], [0], [0], [0, 0, 1, 0], [], []>} : vector<2x256xf32>, vector<32x256xf32>, vector<2x32xf32> -> vector<2x32xf32>
    %c0_17 = arith.constant 0 : index
    %c0_18 = arith.constant 0 : index
    %48 = vector.load %arg7[%c0_17, %c0_18] : memref<1x256xf32, #tpu.memory_space<vmem>>, vector<1x256xf32>
    %49 = vector.extract_strided_slice %24 {offsets = [0, 0], sizes = [1, 32], strides = [1, 1]} : vector<2x32xf32> to vector<1x32xf32>
    %50 = vector.extract_strided_slice %47 {offsets = [0, 0], sizes = [1, 32], strides = [1, 1]} : vector<2x32xf32> to vector<1x32xf32>
    %51 = tpu.concatenate %49, %50 in 0 : vector<1x32xf32>, vector<1x32xf32> -> vector<2x32xf32>
    %c0_19 = arith.constant 0 : index
    %c0_20 = arith.constant 0 : index
    %52 = vector.load %arg6[%c0_19, %c0_20] : memref<64x256xbf16, #tpu.memory_space<vmem>>, vector<32x256xbf16>
    %53 = arith.truncf %51 : vector<2x32xf32> to vector<2x32xbf16>
    %cst_21 = arith.constant dense<0.000000e+00> : vector<2x256xf32>
    %54 = tpu.matmul %53, %52, %cst_21 {dimension_numbers = #tpu.dot_dimension_numbers<[1], [0], [0], [1], [0, 0, 1, 1], [], []>} : vector<2x32xbf16>, vector<32x256xbf16>, vector<2x256xf32> -> vector<2x256xf32>
    %55 = vector.broadcast %48 : vector<1x256xf32> to vector<2x256xf32>
    %56 = arith.addf %55, %54 : vector<2x256xf32>
    %57 = vector.extract_strided_slice %24 {offsets = [1, 0], sizes = [1, 32], strides = [1, 1]} : vector<2x32xf32> to vector<1x32xf32>
    %58 = vector.extract_strided_slice %47 {offsets = [1, 0], sizes = [1, 32], strides = [1, 1]} : vector<2x32xf32> to vector<1x32xf32>
    %59 = tpu.concatenate %57, %58 in 0 : vector<1x32xf32>, vector<1x32xf32> -> vector<2x32xf32>
    %c32 = arith.constant 32 : index
    %c0_22 = arith.constant 0 : index
    %60 = vector.load %arg6[%c32, %c0_22] : memref<64x256xbf16, #tpu.memory_space<vmem>>, vector<32x256xbf16>
    %61 = arith.truncf %59 : vector<2x32xf32> to vector<2x32xbf16>
    %cst_23 = arith.constant dense<0.000000e+00> : vector<2x256xf32>
    %62 = tpu.matmul %61, %60, %cst_23 {dimension_numbers = #tpu.dot_dimension_numbers<[1], [0], [0], [1], [0, 0, 1, 1], [], []>} : vector<2x32xbf16>, vector<32x256xbf16>, vector<2x256xf32> -> vector<2x256xf32>
    %63 = arith.addf %56, %62 : vector<2x256xf32>
    %64 = vector.extract_strided_slice %63 {offsets = [0, 0], sizes = [2, 128], strides = [1, 1]} : vector<2x256xf32> to vector<2x128xf32>
    %65 = vector.extract_strided_slice %63 {offsets = [0, 128], sizes = [2, 128], strides = [1, 1]} : vector<2x256xf32> to vector<2x128xf32>
    %cst_24 = arith.constant 5.000000e-01 : f32
    %66 = vector.broadcast %cst_24 : f32 to vector<2x128xf32>
    %67 = arith.mulf %66, %65 : vector<2x128xf32>
    %68 = math.exp %67 : vector<2x128xf32>
    %c0_25 = arith.constant 0 : index
    %c0_26 = arith.constant 0 : index
    %69 = vector.load %arg5[%c0_25, %c0_26] : memref<2x128xf32, #tpu.memory_space<vmem>>, vector<2x128xf32>
    %70 = arith.mulf %69, %68 : vector<2x128xf32>
    %71 = arith.addf %64, %70 : vector<2x128xf32>
    %c0_27 = arith.constant 0 : index
    %c0_28 = arith.constant 0 : index
    %72 = vector.load %arg8[%c0_27, %c0_28] : memref<128x128xbf16, #tpu.memory_space<vmem>>, vector<128x128xbf16>
    %73 = arith.truncf %71 : vector<2x128xf32> to vector<2x128xbf16>
    %cst_29 = arith.constant dense<0.000000e+00> : vector<2x128xf32>
    %74 = tpu.matmul %73, %72, %cst_29 {dimension_numbers = #tpu.dot_dimension_numbers<[1], [0], [0], [1], [0, 0, 1, 1], [], []>} : vector<2x128xbf16>, vector<128x128xbf16>, vector<2x128xf32> -> vector<2x128xf32>
    %c0_30 = arith.constant 0 : index
    %c0_31 = arith.constant 0 : index
    %75 = vector.load %arg9[%c0_30, %c0_31] : memref<1x128xf32, #tpu.memory_space<vmem>>, vector<1x128xf32>
    %76 = vector.broadcast %75 : vector<1x128xf32> to vector<2x128xf32>
    %77 = arith.addf %74, %76 : vector<2x128xf32>
    %78 = tpu.concatenate %63, %77 in 1 : vector<2x256xf32>, vector<2x128xf32> -> vector<2x384xf32>
    %c0_32 = arith.constant 0 : index
    %c0_33 = arith.constant 0 : index
    %79 = vector.load %arg10[%c0_32, %c0_33] : memref<2x384xf32, #tpu.memory_space<vmem>>, vector<2x384xf32>
    tpu.vector_store %arg10[%c0_32, %c0_33], %78 {strides = array<i32>} : memref<2x384xf32, #tpu.memory_space<vmem>>, vector<2x384xf32>,
    return
  }
  func.func @transform_0(%arg0: i32) -> (i32, i32) {
    %c0_i32 = arith.constant 0 : i32
    %c0_i32_0 = arith.constant 0 : i32
    %c0_i32_1 = arith.constant 0 : i32
    return %c0_i32, %c0_i32_0 : i32, i32
  }
  func.func @transform_1(%arg0: i32) -> (i32, i32) {
    %c0_i32 = arith.constant 0 : i32
    %c0_i32_0 = arith.constant 0 : i32
    %c0_i32_1 = arith.constant 0 : i32
    return %c0_i32, %c0_i32_0 : i32, i32
  }
  func.func @transform_2(%arg0: i32) -> (i32, i32) {
    %c0_i32 = arith.constant 0 : i32
    %c0_i32_0 = arith.constant 0 : i32
    %c0_i32_1 = arith.constant 0 : i32
    return %c0_i32, %c0_i32_0 : i32, i32
  }
  func.func @transform_3(%arg0: i32) -> (i32, i32) {
    %c0_i32 = arith.constant 0 : i32
    %c0_i32_0 = arith.constant 0 : i32
    %c0_i32_1 = arith.constant 0 : i32
    return %c0_i32, %c0_i32_0 : i32, i32
  }
  func.func @transform_4(%arg0: i32) -> (i32, i32) {
    %c0_i32 = arith.constant 0 : i32
    %c0_i32_0 = arith.constant 0 : i32
    %c0_i32_1 = arith.constant 0 : i32
    return %c0_i32, %c0_i32_0 : i32, i32
  }
  func.func @transform_5(%arg0: i32) -> (i32, i32) {
    %c0_i32 = arith.constant 0 : i32
    %c0_i32_0 = arith.constant 0 : i32
    %c0_i32_1 = arith.constant 0 : i32
    return %c0_i32, %c0_i32_0 : i32, i32
  }
  func.func @transform_6(%arg0: i32) -> (i32, i32) {
    %c0_i32 = arith.constant 0 : i32
    %c0_i32_0 = arith.constant 0 : i32
    %c0_i32_1 = arith.constant 0 : i32
    return %c0_i32, %c0_i32_0 : i32, i32
  }
  func.func @transform_7(%arg0: i32) -> (i32, i32) {
    %c0_i32 = arith.constant 0 : i32
    %c0_i32_0 = arith.constant 0 : i32
    %c0_i32_1 = arith.constant 0 : i32
    return %c0_i32, %c0_i32_0 : i32, i32
  }
  func.func @transform_8(%arg0: i32) -> (i32, i32) {
    %c0_i32 = arith.constant 0 : i32
    %c0_i32_0 = arith.constant 0 : i32
    %c0_i32_1 = arith.constant 0 : i32
    return %c0_i32, %c0_i32_0 : i32, i32
  }
  func.func @transform_9(%arg0: i32) -> (i32, i32) {
    %c0_i32 = arith.constant 0 : i32
    %c0_i32_0 = arith.constant 0 : i32
    %c0_i32_1 = arith.constant 0 : i32
    return %c0_i32, %c0_i32_0 : i32, i32
  }
}

</mosaic_0001>

<bundles_post_ra>
// kernel: image_clf_forward.1
= control target key start
LH: loop header
LB: loop body
LE: loop exit
PB: predicated region body
PF: predicated region fallthrough
CT: control target
= control target key end

     0   :  { %v856_v0 = vmov 2   ;;  %v857_v1 = vmov 0   ;;  %v858_v4 = vmov 1   ;;  %v63_v13 = vlaneseq  ;;  %s1184_s1 = inlined_call_operand.vmem [shape: f32[32,3], index: 1, kind: input, shape index: {}]   ;;  %s1185_s2 = inlined_call_operand.vmem [shape: f32[32,1], index: 2, kind: input, shape index: {}]   ;;  %s1186_s3 = inlined_call_operand.vmem [shape: f32[2,256], index: 3, kind: input, shape index: {}]   ;;  %s1187_s0 = inlined_call_operand.vmem [shape: f32[6,256], index: 0, kind: input, shape index: {}]   ;;  %s1188_s5 = inlined_call_operand.vmem [shape: bf16[64,256], index: 5, kind: input, shape index: {}]   ;;  %s1189_s7 = inlined_call_operand.vmem [shape: bf16[128,128], index: 7, kind: input, shape index: {}]   ;;  %s1190_s6 = inlined_call_operand.vmem [shape: f32[1,256], index: 6, kind: input, shape index: {}]   ;;  %s1191_s4 = inlined_call_operand.vmem [shape: f32[2,128], index: 4, kind: input, shape index: {}]   ;;  %s1192_s8 = inlined_call_operand.vmem [shape: f32[1,128], index: 8, kind: input, shape index: {}]   ;;  %s1193_s9 = inlined_call_operand.vmem [shape: f32[2,384], index: 9, kind: output, shape index: {}]  }
   0x1   :  { %822 = vset.pattern.permute.xlu1 %v856_v0  ;;  %821 = vset.pattern.permute.xlu0 %v857_v1  ;;  %v36_v2 = vld [vmem:[%s1184_s1 + $0x18] sm:$0xff]  ;;  %v35_v3 = vld [vmem:[%s1184_s1 + $0x10] sm:$0xff]  ;;  %v34_v5 = vld [vmem:[%s1184_s1 + $0x8] sm:$0xff]  ;;  %vm458_vm0 = vcmask 1040384   ;;  %vm485_vm1 = vcmask 261120   ;;  %vm860_vm2 = vmmov 0  }
   0x2   :  { %141 = vperm.xlu1 %822, %v36_v2   ;;  %59 = vperm.xlu0 %821, %v36_v2   ;;  %v40_v6 = vld [vmem:[%s1185_s2 + $0x18] sm:$0xff]  ;;  %v33_v7 = vld [vmem:[%s1184_s1] sm:$0xff]  ;;  %v38_v8 = vld [vmem:[%s1185_s2 + $0x8] sm:$0xff]  ;;  %v957_v16 = vshrl.u32 %v63_v13, 7 }
   0x3   :  { %521 = vmatprep.mubr.bf16.mxu0 %v857_v1  ;;  %v39_v9 = vld [vmem:[%s1185_s2 + $0x10] sm:$0xff]  ;;  %v37_v10 = vld [vmem:[%s1185_s2] sm:$0xff] }
   0x4   :  { %v946_v11 = vld.sshfl [vmem:[%s1186_s3] sm:$0x33 pattern:$0x76325410]  ;;  %v966_v19 = vsub.s32 0, %v957_v16  ;;  %v969_v20 = vsub.s32 1, %v957_v16 }
   0x5   :  { %v950_v12 = vcombine.high %v946_v11, %v946_v11  ;;  %v41_v17 = vld [vmem:[%s1187_s0] ss:$8 sm:$0x3]  ;;  %v761_v18 = vld [vmem:[%s1187_s0 + $0x1] ss:$8 sm:$0x3] }
   0x6   :  { %823 = vset.pattern.permute.xlu1 %v857_v1  ;;  %825 = vset.pattern.permute.xlu0 %v856_v0  ;;  %v762_v23 = vld [vmem:[%s1187_s0 + $0x2] ss:$8 sm:$0x3]  ;;  %v979_v24 = vrot.slane %v41_v17, %v966_v19  ;;  %v982_v25 = vrot.slane %v41_v17, %v969_v20  ;;  %v985_v26 = vrot.slane %v761_v18, %v966_v19 }
   0x7   :  { %137 = vperm.xlu0 %825, %v35_v3   ;;  %54 = vperm.xlu1 %823, %v35_v3   ;;  %v988_v27 = vrot.slane %v761_v18, %v969_v20  ;;  %v995_v30 = vrot.slane %v762_v23, %v966_v19  ;;  %v998_v31 = vrot.slane %v762_v23, %v969_v20 }
   0x8   :  { %283 = vmatprep.mubr.f32.mxu1 %v950_v12 }
   0xb   :  { %826 = vset.pattern.permute.xlu0 %v858_v4  ;;  %824 = vset.pattern.permute.xlu1 %v858_v4 }
   0xc   :  { %96 = vperm.xlu0 %826, %v36_v2   ;;  %92 = vperm.xlu1 %824, %v35_v3   ;;  %v765_v3 = vld [vmem:[%s1187_s0 + $0x4] ss:$8 sm:$0x3] }
  0x10   :  { %827 = vset.pattern.permute.xlu1 %v857_v1  ;;  %88 = vperm.xlu0 %826, %v34_v5  }
  0x11   :  { %188 = vperm.xlu1 %827, %v40_v6  }
  0x14   :  { %830 = vset.pattern.permute.xlu0 %v857_v1 }
  0x15   :  { %49 = vperm.xlu1 %827, %v34_v5   ;;  %44 = vperm.xlu0 %830, %v33_v7  }
  0x19   :  { %828 = vset.pattern.permute.xlu1 %v856_v0  ;;  %178 = vperm.xlu0 %830, %v38_v8  }
  0x1a   :  { %133 = vperm.xlu1 %828, %v34_v5  }
  0x1e   :  { %829 = vset.pattern.permute.xlu1 %v857_v1 }
  0x1f   :  { %183 = vperm.xlu1 %829, %v39_v9  }
  0x23   :  { %831 = vset.pattern.permute.xlu1 %v858_v4 }
  0x24   :  { %84 = vperm.xlu1 %831, %v33_v7  }
  0x28   :  { %832 = vset.pattern.permute.xlu1 %v856_v0 }
  0x29   :  { %129 = vperm.xlu1 %832, %v33_v7   ;;  %v764_v7 = vld [vmem:[%s1187_s0 + $0x3] ss:$8 sm:$0x3] }
  0x2d   :  { %833 = vset.pattern.permute.xlu1 %v857_v1 }
  0x2e   :  { %173 = vperm.xlu1 %833, %v37_v10   ;;  %v1057_v10 = vrot.slane %v765_v3, %v969_v20 }
  0x7d   :  { %v953_v14 = vpop.permute.xlu1 %141  ;;  %v955_v15 = vpop.permute.xlu0 %59 }
  0x7e   :  { %v79_v28 = vmul.f32 %v979_v24, %v955_v15  ;;  %v80_v29 = vmul.f32 %v982_v25, %v955_v15  ;;  %v161_v38 = vmul.f32 %v995_v30, %v953_v14  ;;  %v162_v39 = vmul.f32 %v998_v31, %v953_v14 }
  0x82   :  { %v971_v21 = vpop.permute.xlu1 %54  ;;  %v973_v22 = vpop.permute.xlu0 %137 }
  0x83   :  { %v77_v54 = vmul.f32 %v979_v24, %v971_v21  ;;  %v78_v55 = vmul.f32 %v982_v25, %v971_v21  ;;  %v159_v58 = vmul.f32 %v995_v30, %v973_v22  ;;  %v160_v59 = vmul.f32 %v998_v31, %v973_v22 }
  0x87   :  { %v1000_v32 = vpop.permute.xlu0 %96  ;;  %v1002_v33 = vpop.permute.xlu1 %92 }
  0x88   :  { %v116_v34 = vmul.f32 %v985_v26, %v1000_v32  ;;  %v117_v35 = vmul.f32 %v988_v27, %v1000_v32  ;;  %v114_v47 = vmul.f32 %v985_v26, %v1002_v33  ;;  %v115_v48 = vmul.f32 %v988_v27, %v1002_v33 }
  0x8a   :  { %v125_v36 = vadd.f32 %v117_v35, %v80_v29  ;;  %v124_v37 = vadd.f32 %v116_v34, %v79_v28  ;;  %v122_v60 = vadd.f32 %v114_v47, %v77_v54  ;;  %v123_v61 = vadd.f32 %v115_v48, %v78_v55  ;;  %v766_v35 = vld [vmem:[%s1187_s0 + $0x5] ss:$8 sm:$0x3] }
  0x8b   :  { %v1014_v41 = vpop.permute.xlu0 %88  ;;  %v299_v29 = vrot.slane %v764_v7, %v969_v20  ;;  %v1066_v34 = vrot.slane %v765_v3, %v966_v19  ;;  %v349_v47 = vrot.slane %v766_v35, %v969_v20  ;;  %v345_v55 = vrot.slane %v766_v35, %v966_v19 }
  0x8c   :  { %v1012_v40 = vpop.permute.xlu1 %188  ;;  %v170_v42 = vadd.f32 %v162_v39, %v125_v36  ;;  %v169_v43 = vadd.f32 %v161_v38, %v124_v37  ;;  %v113_v49 = vmul.f32 %v988_v27, %v1014_v41  ;;  %v112_v56 = vmul.f32 %v985_v26, %v1014_v41 }
  0x8d   :  { %v168_v8 = vadd.f32 %v160_v59, %v123_v61  ;;  %v167_v9 = vadd.f32 %v159_v58, %v122_v60  ;;  %v295_v38 = vrot.slane %v764_v7, %v966_v19  ;;  %v309_v39 = vmul.f32 %v299_v29, %v955_v15 }
  0x8e   :  { %v198_v44 = vadd.f32 %v1012_v40, %v170_v42  ;;  %v197_v45 = vadd.f32 %v1012_v40, %v169_v43  ;;  %v330_v42 = vmul.f32 %v1057_v10, %v1000_v32  ;;  %v307_v58 = vmul.f32 %v299_v29, %v971_v21 }
  0x8f   :  { %v308_v48 = vmul.f32 %v295_v38, %v955_v15  ;;  %v328_v15 = vmul.f32 %v1057_v10, %v1002_v33  ;;  %v357_v3 = vmul.f32 %v349_v47, %v973_v22 }
  0x90   :  { %v1018_v46 = vpop.permute.xlu1 %49  ;;  %v206_v51 = vmax.f32 %v198_v44, 0.0  ;;  %v205_v52 = vmax.f32 %v197_v45, 0.0  ;;  %v1028_v53 = vpop.permute.xlu0 %44 }
  0x91   :  { %v76_v50 = vmul.f32 %v982_v25, %v1018_v46  ;;  %v75_v57 = vmul.f32 %v979_v24, %v1018_v46  ;;  %v304_v35 = vmul.f32 %v295_v38, %v1018_v46 }
  0x92   :  { %243 = vmatprep.subr.mxu1 %v206_v51  ;;  %v74_v51 = vmul.f32 %v982_v25, %v1028_v53  ;;  %v327_v25 = vmul.f32 %v1066_v34, %v1002_v33  ;;  %v326_v33 = vmul.f32 %v1057_v10, %v1014_v41 }
  0x93   :  { %244 = vmatpush1.xpose.msra.mxu1 %v205_v52  ;;  %v121_v2 = vadd.f32 %v113_v49, %v76_v50  ;;  %v120_v5 = vadd.f32 %v112_v56, %v75_v57  ;;  %v329_v49 = vmul.f32 %v1066_v34, %v1000_v32  ;;  %v73_v50 = vmul.f32 %v979_v24, %v1028_v53 }
  0x94   :  { %v1051_v4 = vpop.permute.xlu0 %178  ;;  %v338_v56 = vadd.f32 %v330_v42, %v309_v39  ;;  %v359_v32 = vmul.f32 %v349_v47, %v953_v14 }
  0x95   :  { %v1042_v62 = vpop.permute.xlu1 %133  ;;  %v337_v24 = vadd.f32 %v329_v49, %v308_v48 }
  0x96   :  { %v157_v63 = vmul.f32 %v995_v30, %v1042_v62  ;;  %v158_v0 = vmul.f32 %v998_v31, %v1042_v62  ;;  %v354_v48 = vmul.f32 %v345_v55, %v1042_v62 }
  0x98   :  { %v166_v6 = vadd.f32 %v158_v0, %v121_v2  ;;  %v165_v13 = vadd.f32 %v157_v63, %v120_v5  ;;  %v358_v63 = vmul.f32 %v345_v55, %v953_v14  ;;  %v306_v0 = vmul.f32 %v295_v38, %v971_v21 }
  0x99   :  { %v367_v2 = vadd.f32 %v359_v32, %v338_v56  ;;  %v336_v5 = vadd.f32 %v328_v15, %v307_v58  ;;  %v355_v14 = vmul.f32 %v349_v47, %v1042_v62 }
  0x9a   :  { %v1059_v17 = vpop.permute.xlu1 %183  ;;  %v194_v18 = vadd.f32 %v1051_v4, %v166_v6  ;;  %v193_v43 = vadd.f32 %v1051_v4, %v165_v13 }
  0x9b   :  { %v196_v23 = vadd.f32 %v1059_v17, %v168_v8  ;;  %v195_v28 = vadd.f32 %v1059_v17, %v167_v9  ;;  %v305_v8 = vmul.f32 %v299_v29, %v1018_v46  ;;  %v366_v9 = vadd.f32 %v358_v63, %v337_v24 }
  0x9c   :  { %v202_v45 = vmax.f32 %v194_v18, 0.0  ;;  %v201_v57 = vmax.f32 %v193_v43, 0.0  ;;  %v302_v46 = vmul.f32 %v295_v38, %v1028_v53 }
  0x9d   :  { %v204_v36 = vmax.f32 %v196_v23, 0.0  ;;  %v203_v37 = vmax.f32 %v195_v28, 0.0  ;;  %v375_v23 = vadd.f32 %v367_v2, %v1012_v40  ;;  %v325_v28 = vmul.f32 %v1066_v34, %v1014_v41 }
  0x9e   :  { %v334_v39 = vadd.f32 %v326_v33, %v305_v8 }
  0x9f   :  { %v85_v44 = vpop.permute.xlu1 %84  ;;  %245 = vmatprep.subr.mxu1 %v204_v36  ;;  %v303_v36 = vmul.f32 %v299_v29, %v1028_v53 }
  0xa0   :  { %246 = vmatpush1.xpose.msra.mxu1 %v203_v37  ;;  %v110_v52 = vmul.f32 %v985_v26, %v85_v44  ;;  %v111_v54 = vmul.f32 %v988_v27, %v85_v44  ;;  %v365_v37 = vadd.f32 %v357_v3, %v336_v5  ;;  %v363_v49 = vadd.f32 %v355_v14, %v334_v39  ;;  %v848_v14 = vld [vmem:[%s1189_s7 + $0x28] sm:$0xff]  }
  0xa1   :  { %247 = vmatprep.subr.mxu1 %v202_v45  ;;  %v374_v45 = vadd.f32 %v366_v9, %v1012_v40  ;;  %v846_v9 = vld [vmem:[%s1189_s7 + $0x38] sm:$0xff]  }
  0xa2   :  { %v118_v60 = vadd.f32 %v110_v52, %v73_v50  ;;  %v119_v61 = vadd.f32 %v111_v54, %v74_v51  ;;  %v383_v51 = vmax.f32 %v375_v23, 0.0  ;;  %v373_v41 = vadd.f32 %v365_v37, %v1059_v17  ;;  %v851_v23 = vld [vmem:[%s1189_s7 + $0x10] sm:$0xff]  }
  0xa3   :  { %v333_v52 = vadd.f32 %v325_v28, %v304_v35  ;;  %v323_v54 = vmul.f32 %v1066_v34, %v85_v44  ;;  %v382_v56 = vmax.f32 %v374_v45, 0.0  ;;  %v852_v28 = vld [vmem:[%s1189_s7 + $0x8] sm:$0xff]   ;;  %v853_v35 = vld [vmem:[%s1189_s7] sm:$0xff]  }
  0xa4   :  { %v130_v59 = vpop.permute.xlu1 %129  ;;  %248 = vmatpush1.xpose.msra.mxu1 %v201_v57  ;;  %v381_v32 = vmax.f32 %v373_v41, 0.0 }
  0xa5   :  { %v155_v26 = vmul.f32 %v995_v30, %v130_v59  ;;  %v156_v27 = vmul.f32 %v998_v31, %v130_v59  ;;  %v356_v30 = vmul.f32 %v345_v55, %v973_v22  ;;  %v335_v31 = vadd.f32 %v327_v25, %v306_v0 }
  0xa6   :  { %v324_v22 = vmul.f32 %v1057_v10, %v85_v44  ;;  %v353_v50 = vmul.f32 %v349_v47, %v130_v59  ;;  %v362_v57 = vadd.f32 %v354_v48, %v333_v52  ;;  %v352_v62 = vmul.f32 %v345_v55, %v130_v59 }
  0xa7   :  { %v163_v6 = vadd.f32 %v155_v26, %v118_v60  ;;  %v164_v7 = vadd.f32 %v156_v27, %v119_v61  ;;  %v364_v29 = vadd.f32 %v356_v30, %v335_v31  ;;  %v371_v47 = vadd.f32 %v363_v49, %v1051_v4  ;;  %v837_v26 = vld [vmem:[%s1188_s5 + $0x14] ss:$8 sps:$4 sm:$0xff]   ;;  %v839_v27 = vld [vmem:[%s1188_s5 + $0x10] ss:$8 sps:$4 sm:$0xff]   ;;  %v843_v60 = vld [vmem:[%s1188_s5 + $0x4] ss:$8 sps:$4 sm:$0xff]  }
  0xa8   :  { %v332_v10 = vadd.f32 %v324_v22, %v303_v36  ;;  %v331_v58 = vadd.f32 %v323_v54, %v302_v46  ;;  %v370_v53 = vadd.f32 %v362_v57, %v1051_v4  ;;  %v836_v4 = vld [vmem:[%s1188_s5 + $0x34] ss:$8 sps:$4 sm:$0xff]   ;;  %501 = vmatprep.subr.bf16.mxu0 %v837_v26  ;;  %v845_v61 = vld [vmem:[%s1188_s5] ss:$8 sps:$4 sm:$0xff]   ;;  %v859_v31 = vmov 0.0  }
  0xa9   :  { %v174_v13 = vpop.permute.xlu1 %173  ;;  %v372_v40 = vadd.f32 %v364_v29, %v1059_v17  ;;  %v379_v24 = vmax.f32 %v371_v47, 0.0  ;;  %502 = vmatpush1.bf16.msra.mxu0 %v839_v27  ;;  %v454_v36 = vld [vmem:[%s1190_s6] sm:$0x3]  ;;  %v861_v47 = vmov 1983009808  }
  0xaa   :  { %v191_v18 = vadd.f32 %v174_v13, %v163_v6  ;;  %v192_v21 = vadd.f32 %v174_v13, %v164_v7  ;;  %v361_v15 = vadd.f32 %v353_v50, %v332_v10  ;;  %v360_v38 = vadd.f32 %v352_v62, %v331_v58  ;;  %503 = vmatprep.subr.bf16.mxu0 %v843_v60  ;;  %v777_v58 = vld [vmem:[%s1192_s8] ss:$0 sm:$0xff] }
  0xab   :  { %v380_v34 = vmax.f32 %v372_v40, 0.0  ;;  %v378_v17 = vmax.f32 %v370_v53, 0.0  ;;  %v534_v37 = vrot.slane %v454_v36, %v966_v19  ;;  %v538_v22 = vrot.slane %v454_v36, %v969_v20  ;;  %v621_v19 = vld [vmem:[%s1191_s4] sm:$0x3] }
  0xac   :  { %v200_v42 = vmax.f32 %v192_v21, 0.0  ;;  %v199_v43 = vmax.f32 %v191_v18, 0.0  ;;  %v369_v44 = vadd.f32 %v361_v15, %v174_v13  ;;  %v368_v55 = vadd.f32 %v360_v38, %v174_v13  ;;  %v847_v13 = vld [vmem:[%s1189_s7 + $0x30] sm:$0xff]   ;;  %v849_v18 = vld [vmem:[%s1189_s7 + $0x20] sm:$0xff]   ;;  %v850_v21 = vld [vmem:[%s1189_s7 + $0x18] sm:$0xff]  }
  0xad   :  { %504 = vmatpush1.bf16.msra.mxu0 %v845_v61  ;;  %v741_v15 = vunpack.c.l.s4 %v861_v47 }
  0xae   :  { %249 = vmatprep.subr.mxu1 %v200_v42  ;;  %v377_v25 = vmax.f32 %v369_v44, 0.0  ;;  %v376_v59 = vmax.f32 %v368_v55, 0.0  ;;  %795 = vmatprep.subr.bf16.mxu0 %v859_v31 }
  0xaf   :  { %250 = vmatpush1.xpose.msra.mxu1 %v199_v43 }
  0xb0   :  { %408 = vmatprep.subr.mxu1 %v383_v51 }
  0xb2   :  { %284 = vmatmul.mubr.f32.vlgmr.msra.gmra.mxu1 %v946_v11 }
  0xb3   :  { %409 = vmatpush1.xpose.msra.mxu1 %v382_v56  ;;  %448 = vmatprep.mubr.f32.mxu1 %v950_v12  ;;  %v834_v12 = vld [vmem:[%s1188_s5 + $0x30] ss:$8 sps:$4 sm:$0xff]  }
  0xb4   :  { %410 = vmatprep.subr.mxu1 %v381_v32  ;;  %v742_v32 = vunpack.c.0.s8 %v741_v15 }
  0xb6   :  { %v745_v53 = vsub.s32 %v742_v32, %v957_v16 }
  0xb7   :  { %411 = vmatpush1.xpose.msra.mxu1 %v380_v34 }
  0xb8   :  { %412 = vmatprep.subr.mxu1 %v379_v24 }
  0xbb   :  { %413 = vmatpush1.xpose.msra.mxu1 %v378_v17 }
  0xbc   :  { %414 = vmatprep.subr.mxu1 %v377_v25 }
  0xbf   :  { %415 = vmatpush1.xpose.msra.mxu1 %v376_v59 }
  0xc0   :  { %587 = vmatprep.subr.bf16.mxu1 %v836_v4 }
  0xc2   :  { %449 = vmatmul.mubr.f32.vlgmr.msra.gmra.mxu1 %v946_v11  ;;  %v840_v11 = vld [vmem:[%s1188_s5 + $0x20] ss:$8 sps:$4 sm:$0xff]  }
  0xc3   :  { %607 = vmatprep.mubr.bf16.mxu1 %v857_v1  ;;  %588 = vmatpush1.bf16.msra.mxu1 %v834_v12  ;;  %v842_v1 = vld [vmem:[%s1188_s5 + $0x24] ss:$8 sps:$4 sm:$0xff]  }
  0xc4   :  { %589 = vmatprep.subr.bf16.mxu1 %v842_v1 }
  0xc7   :  { %590 = vmatpush1.bf16.msra.mxu1 %v840_v11 }
 0x172   :  { %v285_v63 = vpop.f32.mrf.mxu1 }
 0x173   :  { %v544_v2 = vrot.slane %v285_v63, 1 }
 0x174   :  { %v287_v0 = vpop.f32.mrf.mxu1 }
 0x182   :  { %v450_v3 = vpop.f32.mrf.mxu1 }
 0x183   :  { %v456_v5 = vrot.slane %v450_v3, 7  ;;  %v546_v6 = vsel %vm458_vm0, %v544_v2, %v450_v3 }
 0x184   :  { %v551_v7 = vpack.c.bf16 %v546_v6, %v546_v6  ;;  %v452_v33 = vpop.f32.mrf.mxu1 }
 0x185   :  { %v459_v8 = vsel %vm458_vm0, %v285_v63, %v456_v5 }
 0x186   :  { %v464_v30 = vpack.c.bf16 %v459_v8, %v459_v8  ;;  %776 = vmatmul.mubr.msk.bf16.vlgmr.msra.gmra.mxu1 %vm485_vm1, %v551_v7 }
 0x188   :  { %771 = vmatmul.mubr.msk.bf16.vlgmr.msra.gmra.mxu0 %vm485_vm1, %v464_v30 }
 0x189   :  { %796 = vmatpush3.bf16.msra.mxu0 %v846_v9  ;;  %811 = vmatprep.mubr.msk.bf16.mxu0 %vm860_vm2, %v859_v31 }
 0x18a   :  { %797 = vmatprep.subr.bf16.mxu0 %v859_v31 }
 0x18d   :  { %798 = vmatpush3.bf16.msra.mxu0 %v847_v13 }
 0x18e   :  { %799 = vmatprep.subr.bf16.mxu0 %v859_v31 }
 0x191   :  { %800 = vmatpush3.bf16.msra.mxu0 %v848_v14 }
 0x192   :  { %801 = vmatprep.subr.bf16.mxu0 %v859_v31 }
 0x195   :  { %802 = vmatpush3.bf16.msra.mxu0 %v849_v18 }
 0x196   :  { %803 = vmatprep.subr.bf16.mxu0 %v859_v31 }
 0x199   :  { %804 = vmatpush3.bf16.msra.mxu0 %v850_v21 }
 0x19a   :  { %805 = vmatprep.subr.bf16.mxu0 %v859_v31 }
 0x19d   :  { %806 = vmatpush3.bf16.msra.mxu0 %v851_v23 }
 0x19e   :  { %807 = vmatprep.subr.bf16.mxu0 %v859_v31 }
 0x1a1   :  { %808 = vmatpush3.bf16.msra.mxu0 %v852_v28 }
 0x1a2   :  { %809 = vmatprep.subr.bf16.mxu0 %v859_v31 }
 0x1a5   :  { %810 = vmatpush3.bf16.msra.mxu0 %v853_v35 }
 0x246   :  { %v609_v39 = vpop.f32.mrf.mxu1 }
 0x248   :  { %v523_v42 = vpop.f32.mrf.mxu0  ;;  %v611_v43 = vpop.f32.mrf.mxu1 }
 0x249   :  { %v541_v45 = vadd.f32 %v534_v37, %v523_v42 }
 0x24a   :  { %v525_v48 = vpop.f32.mrf.mxu0  ;;  %v613_v49 = vpop.f32.mrf.mxu1 }
 0x24b   :  { %v542_v50 = vadd.f32 %v538_v22, %v525_v48  ;;  %v616_v46 = vadd.f32 %v609_v39, %v541_v45 }
 0x24c   :  { %v527_v51 = vpop.f32.mrf.mxu0  ;;  %v614_v41 = vpop.f32.mrf.mxu1 }
 0x24d   :  { %v617_v52 = vadd.f32 %v611_v43, %v542_v50 }
 0x24e   :  { %v528_v29 = vpop.f32.mrf.mxu0 }
 0x24f   :  { %v618_v54 = vmul.f32 0.5, %v617_v52  ;;  %v739_v10 = vcombine.low %v616_v46, %v617_v52 }
 0x251   :  { %v619_v56 = vmul.f32 1.442695, %v618_v54  ;;  %v746_v24 = vrot.slane %v739_v10, %v745_v53 }
 0x253   :  { %854 = vpow2.f32 %v619_v56 }
 0x260   :  { %v855_v20 = vpop.eup %854 }
 0x261   :  { %v622_v57 = vmul.f32 %v855_v20, %v621_v19 }
 0x263   :  { %v623_v40 = vadd.f32 %v622_v57, %v616_v46 }
 0x265   :  { %v640_v62 = vpack.c.bf16 %v623_v40, %v623_v40 }
 0x267   :  { %812 = vmatmul.mubr.bf16.vlgmr.msra.gmra.mxu0 %v640_v62 }
 0x327   :  { %v730_v34 = vpop.f32.mrf.mxu0 }
 0x328   :  { %v731_v38 = vadd.f32 %v777_v58, %v730_v34 }
 0x329   :  { %v813_v44 = vpop.f32.mrf.mxu0 }
 0x32a   :  { %v753_v17 = vrot.slane %v731_v38, %v745_v53 }
 0x32b   :  { %v733_v55 = vpop.f32.mrf.mxu0 }
 0x32c   :  { %v754_v25 = vcombine.low %v746_v24, %v753_v17 }
 0x32d   :  { %v814_v59 = vpop.f32.mrf.mxu0 }
 0x32e   :  { %756 = vst [vmem:[%s1193_s9] sm:$0x3f] %v754_v25 }

</bundles_post_ra>
